<compile_context>
chip_gen: v6e
topology: v6e:2x2x1
jax: 0.10.0
libtpu: 0.0.40
codegen_flags: <defaults>
</compile_context>

<pallas_src>
import jax
import jax.numpy as jnp
from jax import lax
from jax.experimental import pallas as pl
from jax.experimental.pallas import tpu as pltpu

_EPS = 1e-10
_MIN_GRID_STEPS = 4          # keep >= this many grid steps for v7x dual-TC


# ---------------- single-pass kernel (whole row resident in VMEM) -----------

def _l2norm_kernel(x_ref, o_ref):
    x = x_ref[...]                                   # native dtype, (rows, D)
    xf = x.astype(jnp.float32)                       # cast fused per-use
    sq = jnp.sum(xf * xf, axis=-1, keepdims=True)    # f32 accumulate, (rows,1)
    inv = pl.reciprocal(jnp.sqrt(sq) + _EPS, approx=False)
    if x.dtype == jnp.float32:
        o_ref[...] = xf * inv
    else:
        # native-dtype scale (bf16 VALU on v6e/v7x); avoids a 2nd f32 tile
        o_ref[...] = (x * inv.astype(x.dtype)).astype(o_ref.dtype)


# ---------------- two-pass kernels (very-large-D fallback) ------------------

def _make_sumsq_kernel(d_total, dcols):
    needs_mask = (d_total % dcols) != 0

    def kernel(x_ref, inv_ref, acc_ref):
        @pl.when(pl.program_id(1) == 0)
        def _():
            acc_ref[...] = jnp.zeros_like(acc_ref)

        xf = x_ref[...].astype(jnp.float32)
        if needs_mask:   # zero lanes past D in the (read-padded) edge block
            col = (pl.program_id(1) * dcols
                   + lax.broadcasted_iota(jnp.int32, xf.shape, 1))
            xf = jnp.where(col < d_total, xf, 0.0)
        acc_ref[...] += jnp.sum(xf * xf, axis=-1, keepdims=True)

        @pl.when(pl.program_id(1) == pl.num_programs(1) - 1)
        def _():
            inv_ref[...] = pl.reciprocal(jnp.sqrt(acc_ref[...]) + _EPS,
                                         approx=False)

    return kernel


def _scale_kernel(x_ref, inv_ref, o_ref):
    x = x_ref[...]
    inv = inv_ref[...]                               # (rows, 1) float32
    if x.dtype == jnp.float32:
        o_ref[...] = x * inv
    else:
        o_ref[...] = (x * inv.astype(x.dtype)).astype(o_ref.dtype)


# ---------------- tiling heuristics ------------------------------------------

def _vmem_capacity_bytes():
    try:
        cap = int(pltpu.get_tpu_info().vmem_capacity_bytes)
        if cap > 0:
            return cap
    except Exception:
        pass
    return 64 * 1024 * 1024       # conservative default (v7x per-core VMEM)


def _round_down(x, m):
    return x // m * m


def _choose_rows(n, d, dtype_bytes, budget_bytes):
    """Rows per block for the single-pass kernel; 0 => use two-pass fallback."""
    # 2 double-buffered specs (in + out) plus one f32 temp for the reduction.
    per_row = 4 * d * dtype_bytes + 4 * d
    max_rows = _round_down(budget_bytes // per_row, 8)
    if max_rows < 8:
        return 0                                     # doesn't fit -> two-pass
    rows = max_rows
    if n >= 16:
        # keep >= _MIN_GRID_STEPS grid steps so both v7x TCs get work
        rows = min(rows, max(8, _round_down(n // _MIN_GRID_STEPS, 8)))
    if n <= rows:
        return n                                     # one block covers all rows
    return rows


def _choose_two_pass_tiles(n, d, dtype_bytes, budget_bytes, block_cols=None):
    rows = min(n, 8)
    per_cell = 4 * dtype_bytes + 4                   # 2x(in+out) + f32 temp
    dcols = _round_down(budget_bytes // (rows * per_cell), 128)
    dcols = max(128, dcols)
    if block_cols is not None:
        dcols = block_cols
    dcols = min(dcols, d)
    return rows, dcols


# ---------------- wrapper -----------------------------------------------------

def l2norm(x, *, force_two_pass=False, block_cols=None):
    """x: (N, C, H, W) -> x / (||x||_2 over dims [1, 2, 3] + 1e-10)."""
    N, C, H, W = x.shape
    D = C * H * W
    x2 = x.reshape(N, D)                             # free: contiguous view

    dtype_bytes = jnp.dtype(x.dtype).itemsize
    vmem_cap = _vmem_capacity_bytes()
    budget = int(0.30 * vmem_cap)                    # block-data budget
    vmem_limit = int(0.50 * vmem_cap)                # scoped-VMEM limit

    rows = 0 if force_two_pass else _choose_rows(N, D, dtype_bytes, budget)

    if rows > 0:
        cost = pl.CostEstimate(
            flops=3 * N * D,                         # square + reduce + scale
            transcendentals=2 * N,                   # sqrt + reciprocal / row
            bytes_accessed=2 * N * D * dtype_bytes,
        )
        out = pl.pallas_call(
            _l2norm_kernel,
            out_shape=jax.ShapeDtypeStruct((N, D), x.dtype),
            grid_spec=pltpu.PrefetchScalarGridSpec(
                num_scalar_prefetch=0,
                grid=(pl.cdiv(N, rows),),
                in_specs=[pl.BlockSpec((rows, D), lambda i: (i, 0))],
                out_specs=pl.BlockSpec((rows, D), lambda i: (i, 0)),
            ),
            compiler_params=pltpu.CompilerParams(
                dimension_semantics=("parallel",),
                vmem_limit_bytes=vmem_limit,
            ),
            cost_estimate=cost,
        )(x2)
        return out.reshape(N, C, H, W)

    # ---- two-pass fallback: D too large for a whole-row block in VMEM ----
    rows2, dcols = _choose_two_pass_tiles(N, D, dtype_bytes, budget, block_cols)
    grid = (pl.cdiv(N, rows2), pl.cdiv(D, dcols))

    inv = pl.pallas_call(
        _make_sumsq_kernel(D, dcols),
        out_shape=jax.ShapeDtypeStruct((N, 1), jnp.float32),
        grid_spec=pltpu.PrefetchScalarGridSpec(
            num_scalar_prefetch=0,
            grid=grid,
            in_specs=[pl.BlockSpec((rows2, dcols), lambda i, j: (i, j))],
            out_specs=pl.BlockSpec((rows2, 1), lambda i, j: (i, 0)),
            scratch_shapes=[pltpu.VMEM((rows2, 1), jnp.float32)],
        ),
        compiler_params=pltpu.CompilerParams(
            dimension_semantics=("parallel", "arbitrary"),
            vmem_limit_bytes=vmem_limit,
        ),
    )(x2)

    out = pl.pallas_call(
        _scale_kernel,
        out_shape=jax.ShapeDtypeStruct((N, D), x.dtype),
        grid_spec=pltpu.PrefetchScalarGridSpec(
            num_scalar_prefetch=0,
            grid=grid,
            in_specs=[pl.BlockSpec((rows2, dcols), lambda i, j: (i, j)),
                      pl.BlockSpec((rows2, 1), lambda i, j: (i, 0))],
            out_specs=pl.BlockSpec((rows2, dcols), lambda i, j: (i, j)),
        ),
        compiler_params=pltpu.CompilerParams(
            dimension_semantics=("parallel", "parallel"),
            vmem_limit_bytes=vmem_limit,
        ),
    )(x2, inv)
    return out.reshape(N, C, H, W)


if __name__ == "__main__":
    key = jax.random.PRNGKey(0)
    # small NCHW input consistent with the CIFAR-style module
    x = jax.random.normal(key, (2, 4, 16, 16), dtype=jnp.float32)

    # reference (plain JAX)
    ref = x / (jnp.sqrt(jnp.sum(x * x, axis=(1, 2, 3), keepdims=True)) + 1e-10)

    # main single-pass path
    y = jax.block_until_ready(l2norm(x))
    assert y.shape == x.shape and y.dtype == x.dtype
    assert jnp.allclose(y, ref, atol=1e-5, rtol=1e-5)

    # also exercise the large-D two-pass fallback path (forced, small tiles)
    y2 = jax.block_until_ready(l2norm(x, force_two_pass=True, block_cols=256))
    assert y2.shape == x.shape and y2.dtype == x.dtype
    assert jnp.allclose(y2, ref, atol=1e-5, rtol=1e-5)

    print("KERNEL_OK")
</pallas_src>

<mosaic_0001>
module attributes {stable_mosaic.version = 11 : i64} {
  func.func @_l2norm_kernel(%arg0: i32, %arg1: memref<2x1024xf32, #tpu.memory_space<vmem>>, %arg2: memref<2x1024xf32, #tpu.memory_space<vmem>>) attributes {dimension_semantics = [#tpu.dimension_semantics<parallel>], iteration_bounds = array<i64: 1>, scalar_prefetch = 0 : i64, scratch_operands = 0 : i64, tpu.core_type = #tpu.core_type<tc>, window_params = [{transform_indices = @transform_0, window_bounds = array<i64: 2, 1024>}, {transform_indices = @transform_1, window_bounds = array<i64: 2, 1024>}]} {
    %c0 = arith.constant 0 : index
    %c0_0 = arith.constant 0 : index
    %0 = vector.load %arg1[%c0, %c0_0] : memref<2x1024xf32, #tpu.memory_space<vmem>>, vector<2x1024xf32>
    %1 = arith.mulf %0, %0 : vector<2x1024xf32>
    %cst = arith.constant dense<0.000000e+00> : vector<2xf32>
    %2 = vector.multi_reduction <add>, %1, %cst [1] : vector<2x1024xf32> to vector<2xf32>
    %3 = vector.shape_cast %2 : vector<2xf32> to vector<2x1xf32>
    %4 = math.sqrt %3 : vector<2x1xf32>
    %cst_1 = arith.constant 1.000000e-10 : f32
    %5 = vector.broadcast %cst_1 : f32 to vector<2x1xf32>
    %6 = arith.addf %4, %5 : vector<2x1xf32>
    %7 = tpu.reciprocal %6 : vector<2x1xf32> -> vector<2x1xf32>
    %8 = vector.broadcast %7 : vector<2x1xf32> to vector<2x1024xf32>
    %9 = arith.mulf %0, %8 : vector<2x1024xf32>
    %c0_2 = arith.constant 0 : index
    %c0_3 = arith.constant 0 : index
    %10 = vector.load %arg2[%c0_2, %c0_3] : memref<2x1024xf32, #tpu.memory_space<vmem>>, vector<2x1024xf32>
    tpu.vector_store %arg2[%c0_2, %c0_3], %9 {strides = array<i32>} : memref<2x1024xf32, #tpu.memory_space<vmem>>, vector<2x1024xf32>,
    return
  }
  func.func @transform_0(%arg0: i32) -> (i32, i32) {
    %c0_i32 = arith.constant 0 : i32
    %c0_i32_0 = arith.constant 0 : i32
    return %arg0, %c0_i32 : i32, i32
  }
  func.func @transform_1(%arg0: i32) -> (i32, i32) {
    %c0_i32 = arith.constant 0 : i32
    %c0_i32_0 = arith.constant 0 : i32
    return %arg0, %c0_i32 : i32, i32
  }
}

</mosaic_0001>

<bundles_post_ra>
// kernel: tpu_custom_call.1
= control target key start
LH: loop header
LB: loop body
LE: loop exit
PB: predicated region body
PF: predicated region fallthrough
CT: control target
= control target key end

     0   :  { %6 = vsyncpa [#allocation3], 0  ;;  %s204_s0 = inlined_call_operand.hbm [shape: f32[2,1024], index: 0, kind: input, shape index: {}]   ;;  %s205_s1 = inlined_call_operand.hbm [shape: f32[2,1024], index: 1, kind: output, shape index: {}]  }
   0x1   :  { %7 = vsyncpa [#allocation4], 0  ;;  %s176_s6 = smov [#allocation2]  }
   0x2   :  { %s14_s7 = sshll.u32 %s176_s6, 4  ;;  %s15_s7 = int_to_ptr.vmem [resolvable:$true] %s14_s7 }
   0x3   :  { %s140_s8 = scalar_lea.vmem %s15_s7, 256  ;;  %p145_p1 = scmp.lt.s32.totalorder %s15_s7, %s15_s7 }
   0x4   :  { %p141_p0 = scmp.ne.s32.totalorder %s15_s7, %s140_s8  ;;  %p146_p2 = scmp.lt.s32.totalorder %s140_s8, %s140_s8 }
   0x6   :  { %p147_p3 = por %p146_p2, %p145_p1 }
   0x8   :  { %p148_p4 = pnand %p147_p3, %p141_p0 }
   0xa   :  { %151 = shalt.err (!%p148_p4)
}
   0xb   :  { %17 = dma.hbm_to_vmem [thread:$0]  %s204_s0, 256, %s15_s7, [#allocation3]  }
   0xc   :  { %172 = dma.done.wait [#allocation3], 256  }
   0xd   :  { %173 = vsyncadd [#allocation3], 4294967040  ;;  %v31_v0 = vlaneseq  ;;  %v177_v1 = vmov 1983009808   ;;  %v21_v6 = vld [vmem:[#allocation2] sm:$0xff]  ;;  %v22_v7 = vld [vmem:[#allocation2 + $0x8] sm:$0xff] }
   0xe   :  { %v29_v2 = vunpack.c.l.s4 %v177_v1  ;;  %v23_v8 = vmul.f32 %v21_v6, %v21_v6  ;;  %v24_v9 = vmul.f32 %v22_v7, %v22_v7  ;;  %vm69_vm0 = vcmask 1041408   ;;  %s179_s0 = smov [#allocation5]  }
   0xf   :  { %v32_v3 = vshrl.u32 %v31_v0, 7  ;;  %v178_v42 = vmov 269488144   ;;  %s115_s11 = sshll.u32 %s179_s0, 4  ;;  %s116_s11 = int_to_ptr.vmem [resolvable:$true] %s115_s11 }
  0x10   :  { %v30_v4 = vunpack.c.0.s8 %v29_v2  ;;  %v27_v10 = vcombine.high %v23_v8, %v23_v8  ;;  %v44_v14 = vcombine.high %v24_v9, %v24_v9  ;;  %v98_v43 = vunpack.c.l.s4 %v178_v42  ;;  %s152_s12 = scalar_lea.vmem %s116_s11, 256  ;;  %p157_p6 = scmp.lt.s32.totalorder %s116_s11, %s116_s11 }
  0x11   :  { %p153_p5 = scmp.ne.s32.totalorder %s116_s11, %s152_s12  ;;  %p158_p7 = scmp.lt.s32.totalorder %s152_s12, %s152_s12 }
  0x12   :  { %v33_v5 = vsub.s32 %v30_v4, %v32_v3  ;;  %v99_v44 = vunpack.c.0.s8 %v98_v43 }
  0x13   :  { %p159_p8 = por %p158_p7, %p157_p6 }
  0x14   :  { %v34_v11 = vrot.slane %v23_v8, %v33_v5  ;;  %v41_v12 = vrot.slane %v27_v10, %v33_v5  ;;  %v51_v15 = vrot.slane %v24_v9, %v33_v5  ;;  %v58_v21 = vrot.slane %v44_v14, %v33_v5 }
  0x15   :  { %v102_v45 = vsub.s32 %v99_v44, %v32_v3  ;;  %p160_p9 = pnand %p159_p8, %p153_p5 }
  0x16   :  { %v42_v13 = vcombine.high %v34_v11, %v34_v11  ;;  %v70_v16 = vsel %vm69_vm0, %v34_v11, 0.0  ;;  %v43_v17 = vcombine.high %v41_v12, %v41_v12  ;;  %v73_v19 = vsel %vm69_vm0, %v41_v12, 0.0 }
  0x17   :  { %v59_v22 = vcombine.high %v51_v15, %v51_v15  ;;  %v77_v25 = vsel %vm69_vm0, %v51_v15, 0.0  ;;  %v60_v27 = vcombine.high %v58_v21, %v58_v21  ;;  %v81_v30 = vsel %vm69_vm0, %v58_v21, 0.0 }
  0x18   :  { %v71_v18 = vsel %vm69_vm0, %v42_v13, 0.0  ;;  %v75_v23 = vsel %vm69_vm0, %v43_v17, 0.0 }
  0x19   :  { %v72_v20 = vadd.f32 %v71_v18, %v70_v16  ;;  %v79_v28 = vsel %vm69_vm0, %v59_v22, 0.0  ;;  %v83_v32 = vsel %vm69_vm0, %v60_v27, 0.0 }
  0x1b   :  { %v74_v24 = vadd.f32 %v73_v19, %v72_v20 }
  0x1d   :  { %v76_v26 = vadd.f32 %v75_v23, %v74_v24 }
  0x1f   :  { %v78_v29 = vadd.f32 %v77_v25, %v76_v26 }
  0x21   :  { %v80_v31 = vadd.f32 %v79_v28, %v78_v29 }
  0x23   :  { %v82_v33 = vadd.f32 %v81_v30, %v80_v31 }
  0x25   :  { %v84_v34 = vadd.f32 %v83_v32, %v82_v33 }
  0x27   :  { %85 = vadd.xlane.f32.xlu0 %v84_v34 }
  0xb0   :  { %v86_v35 = vpop.xlane.xlu0 %85 }
  0xb1   :  { %128 = vrsqrt.f32 %v86_v35  ;;  %vm89_vm1 = vcmp.eq.f32.partialorder %v86_v35, inf  ;;  %v92_v38 = vand.u32 2147483648, %v86_v35  ;;  %vm91_vm2 = vcmp.eq.f32.partialorder %v86_v35, 0.0 }
  0xbe   :  { %v129_v36 = vpop.eup %128 }
  0xbf   :  { %v88_v37 = vmul.f32 %v129_v36, %v86_v35 }
  0xc1   :  { %v90_v39 = vsel %vm89_vm1, %v86_v35, %v88_v37 }
  0xc2   :  { %v93_v40 = vsel %vm91_vm2, %v92_v38, %v90_v39 }
  0xc3   :  { %v94_v41 = vadd.f32 1e-10, %v93_v40 }
  0xc5   :  { %130 = vrcp.f32 %v94_v41 }
  0xd2   :  { %v131_v46 = vpop.eup %130 }
  0xd3   :  { %v103_v47 = vrot.slane %v131_v46, %v102_v45 }
  0xd5   :  { %v105_v48 = vmul.f32 %v103_v47, %v21_v6  ;;  %v106_v49 = vmul.f32 %v103_v47, %v22_v7 }
  0xd7   :  { %107 = vst [vmem:[#allocation5] sm:$0xff] %v105_v48  ;;  %108 = vst [vmem:[#allocation5 + $0x8] sm:$0xff] %v106_v49 }
  0xd8   :  { %163 = shalt.err (!%p160_p9)
}
  0xd9   :  { %118 = dma.vmem_to_hbm [thread:$0]  %s116_s11, 256, %s205_s1, [#allocation4]  }
  0xda   :  { %174 = dma.done.wait [#allocation4], 256  }
  0xdb   :  { %175 = vsyncadd [#allocation4], 4294967040 }
  0xdc   :  { %122 = vsyncpa [#allocation3], 1 }
  0xdd   :  { %123 = vsyncpa [#allocation4], 1 }

</bundles_post_ra>
